<compile_context>
chip_gen: v7x
topology: tpu7x:2x2x1
jax: 0.10.0
libtpu: 0.0.40
codegen_flags: <defaults>
</compile_context>

<pallas_src>
import jax
import jax.numpy as jnp
from jax.experimental import pallas as pl
from jax.experimental.pallas import tpu as pltpu

H1 = 128
H2 = 64
LANE = 128


def _round_up(x, m):
    return ((x + m - 1) // m) * m


def _is_pre_v6_tpu():
    """True on TPU generations whose MXUs are 128x128 (v5e and older)."""
    try:
        kind = jax.devices()[0].device_kind.lower()
    except Exception:
        return False
    return any(g in kind for g in ("v2", "v3", "v4", "v5"))


def _block_diag(mats):
    """(A, K, N) per-agent weight stack -> (A*K, A*N) block-diagonal matrix."""
    a, k, n = mats.shape
    out = jnp.zeros((a * k, a * n), mats.dtype)
    for i in range(a):
        out = out.at[i * k:(i + 1) * k, i * n:(i + 1) * n].set(mats[i])
    return out


# ---------------------------------------------------------------------------
# Kernels
# ---------------------------------------------------------------------------

def _qnet_kernel_merged(obs_ref, w1_ref, b1_ref, w2_ref, b2_ref, w3_ref, b3_ref,
                        out_ref):
    """Block-diagonal path (v6e/v7x): 3 merged matmuls per batch tile.

    obs_ref : (TB, A*obs_dim)          compute dtype (bf16 or f32)
    w1_ref  : (A*obs_dim, A*H1)        block-diagonal, VMEM-resident
    w2_ref  : (A*H1, A*H2)             block-diagonal, VMEM-resident
    w3_ref  : (A*H2, out_pad)          block-diagonal + lane padding
    b*_ref  : (1, N)                   f32 biases
    out_ref : (TB, out_pad)            f32, single unmasked lane-dense store
    """
    x = obs_ref[...]
    h1 = jnp.dot(x, w1_ref[...], preferred_element_type=jnp.float32) + b1_ref[...]
    h1 = jnp.maximum(h1, 0.0)
    h2 = jnp.dot(h1.astype(w2_ref.dtype), w2_ref[...],
                 preferred_element_type=jnp.float32) + b2_ref[...]
    h2 = jnp.maximum(h2, 0.0)
    q = jnp.dot(h2.astype(w3_ref.dtype), w3_ref[...],
                preferred_element_type=jnp.float32) + b3_ref[...]
    out_ref[...] = q.astype(out_ref.dtype)


def _qnet_kernel_per_agent(obs_ref, w1_ref, b1_ref, w2_ref, b2_ref, w3_ref, b3_ref,
                           out_ref):
    """Per-agent path (v5e): unrolled per-agent layers 1-2, merged layer 3.

    w1_ref : (A, obs_dim, H1), w2_ref : (A, H1, H2) per-agent stacks
    w3_ref : (A*H2, out_pad) block-diagonal + lane padding
    """
    num_agents, obs_dim, _ = w1_ref.shape
    h2_parts = []
    for a in range(num_agents):                       # small & static -> unrolled
        x = obs_ref[:, a * obs_dim:(a + 1) * obs_dim]
        h1 = jnp.dot(x, w1_ref[a], preferred_element_type=jnp.float32) + b1_ref[a]
        h1 = jnp.maximum(h1, 0.0)
        h2 = jnp.dot(h1.astype(w2_ref.dtype), w2_ref[a],
                     preferred_element_type=jnp.float32) + b2_ref[a]
        h2_parts.append(jnp.maximum(h2, 0.0))
    h2_all = jnp.concatenate(h2_parts, axis=-1).astype(w3_ref.dtype)  # (TB, A*H2)
    q = jnp.dot(h2_all, w3_ref[...], preferred_element_type=jnp.float32) + b3_ref[...]
    out_ref[...] = q.astype(out_ref.dtype)


# ---------------------------------------------------------------------------
# One-time parameter preparation (hoisted out of the forward call)
# ---------------------------------------------------------------------------

def prepare_params(params, *, compute_dtype=jnp.bfloat16, merge_layers=None):
    """Pad / block-diagonalize / cast the per-agent weights once.

    compute_dtype: matmul-operand dtype (bf16 recommended on v6e/v7x; f32 for
                   bit-faithful parity with the PyTorch module).
    merge_layers : merge layers 1-2 into block-diagonal matmuls (auto: off on
                   v5e and older, on otherwise).  Layer 3 is always merged.
    """
    w1, b1, w2, b2, w3, b3 = params
    num_agents, obs_dim, _ = w1.shape
    n_act = w3.shape[-1]
    out_pad = _round_up(num_agents * n_act, LANE)
    if merge_layers is None:
        merge_layers = not _is_pre_v6_tpu()

    # Layer 3: block-diagonal + zero-pad to a lane-dense output width.
    w3bd = _block_diag(w3)                                        # (A*H2, A*n_act)
    w3bd = jnp.pad(w3bd, ((0, 0), (0, out_pad - num_agents * n_act)))
    b3c = jnp.pad(b3.reshape(1, num_agents * n_act),
                  ((0, 0), (0, out_pad - num_agents * n_act)))

    if merge_layers:
        w1p = _block_diag(w1)                                     # (A*obs_dim, A*H1)
        w2p = _block_diag(w2)                                     # (A*H1, A*H2)
        b1p = b1.reshape(1, num_agents * H1)
        b2p = b2.reshape(1, num_agents * H2)
    else:
        w1p, w2p, b1p, b2p = w1, w2, b1, b2

    weights = tuple(w.astype(compute_dtype) for w in (w1p, w2p, w3bd))
    biases = tuple(b.astype(jnp.float32) for b in (b1p, b2p, b3c))
    meta = dict(num_agents=num_agents, obs_dim=obs_dim, n_act=n_act,
                out_pad=out_pad, merged=bool(merge_layers),
                compute_dtype=compute_dtype)
    return weights, biases, meta


# ---------------------------------------------------------------------------
# Forward
# ---------------------------------------------------------------------------

def _resident_spec(arr):
    """Constant-block-index spec: DMA'd once, stays VMEM-resident."""
    zeros = (0,) * arr.ndim
    return pl.BlockSpec(arr.shape, lambda b, _z=zeros: _z)


def qnet_forward(obs, prepared, *, batch_tile=1024):
    """obs: (batch, num_agents, obs_dim) -> (batch, num_agents, n_actions)."""
    (w1p, w2p, w3p), (b1p, b2p, b3p), meta = prepared
    num_agents, obs_dim = meta["num_agents"], meta["obs_dim"]
    n_act, out_pad = meta["n_act"], meta["out_pad"]
    cdt = meta["compute_dtype"]

    batch = obs.shape[0]
    assert obs.shape[1] == num_agents and obs.shape[2] == obs_dim

    # Contiguous reshape (free) + operand-dtype cast; NOT a transpose.
    obs_flat = obs.reshape(batch, num_agents * obs_dim).astype(cdt)

    # Batch tiling: >=2 grid steps whenever possible (v7x megacore), tiles a
    # multiple of 8 rows, capped at `batch_tile`; pad batch to a tile multiple
    # instead of falling back to one huge block.
    min_steps = 2 if batch >= 16 else 1
    tb = max(8, min(batch_tile, _round_up(pl.cdiv(batch, min_steps), 8)))
    padded_batch = _round_up(batch, tb)
    if padded_batch != batch:
        obs_flat = jnp.pad(obs_flat, ((0, padded_batch - batch), (0, 0)))
    grid = (padded_batch // tb,)

    kernel = _qnet_kernel_merged if meta["merged"] else _qnet_kernel_per_agent

    grid_spec = pltpu.PrefetchScalarGridSpec(
        num_scalar_prefetch=0,
        grid=grid,
        in_specs=[
            # obs tile: new block each grid step (double-buffered DMA).
            pl.BlockSpec((tb, num_agents * obs_dim), lambda b: (b, 0)),
            # Weights / biases: constant block index -> resident in VMEM.
            _resident_spec(w1p), _resident_spec(b1p),
            _resident_spec(w2p), _resident_spec(b2p),
            _resident_spec(w3p), _resident_spec(b3p),
        ],
        out_specs=pl.BlockSpec((tb, out_pad), lambda b: (b, 0)),
    )

    out_flat = pl.pallas_call(
        kernel,
        out_shape=jax.ShapeDtypeStruct((padded_batch, out_pad), jnp.float32),
        grid_spec=grid_spec,
        compiler_params=pltpu.CompilerParams(
            dimension_semantics=("parallel",)),   # batch tiles shard across cores
    )(obs_flat, w1p, b1p, w2p, b2p, w3p, b3p)

    # Drop batch padding and lane padding; un-flatten the agent axis.
    out = out_flat[:batch, :num_agents * n_act]
    return out.reshape(batch, num_agents, n_act)


# ---------------------------------------------------------------------------
# Init + pure-JAX reference (mirrors the PyTorch module)
# ---------------------------------------------------------------------------

def init_params(key, num_agents, obs_dim, n_act):
    """PyTorch-style uniform(+-1/sqrt(fan_in)) init, stacked per agent."""
    def uinit(k, shape, fan_in):
        bound = 1.0 / jnp.sqrt(jnp.float32(fan_in))
        return jax.random.uniform(k, shape, jnp.float32, -bound, bound)

    ks = jax.random.split(key, 6)
    w1 = uinit(ks[0], (num_agents, obs_dim, H1), obs_dim)
    b1 = uinit(ks[1], (num_agents, H1), obs_dim)
    w2 = uinit(ks[2], (num_agents, H1, H2), H1)
    b2 = uinit(ks[3], (num_agents, H2), H1)
    w3 = uinit(ks[4], (num_agents, H2, n_act), H2)
    b3 = uinit(ks[5], (num_agents, n_act), H2)
    return (w1, b1, w2, b2, w3, b3)


def qnet_reference(obs, params):
    w1, b1, w2, b2, w3, b3 = params
    outs = []
    for a in range(obs.shape[1]):
        x = obs[:, a, :]
        h1 = jnp.maximum(x @ w1[a] + b1[a], 0.0)
        h2 = jnp.maximum(h1 @ w2[a] + b2[a], 0.0)
        outs.append((h2 @ w3[a] + b3[a])[:, None, :])
    return jnp.concatenate(outs, axis=1)


# TODO(synk): sample_action's epsilon-greedy host RNG and set_device() are
# framework/device plumbing with no kernel equivalent; only forward() is ported.

if __name__ == "__main__":
    key = jax.random.PRNGKey(0)
    k_obs, k_par = jax.random.split(key)

    batch, num_agents, obs_dim, n_act = 8, 3, 16, 8
    obs = jax.random.normal(k_obs, (batch, num_agents, obs_dim), jnp.float32)
    params = init_params(k_par, num_agents, obs_dim, n_act)
    q_ref = qnet_reference(obs, params)

    # f32 operands, both kernel paths: exact parity with the PyTorch module.
    for merged in (True, False):
        prep = prepare_params(params, compute_dtype=jnp.float32,
                              merge_layers=merged)
        q = qnet_forward(obs, prep)
        jax.block_until_ready(q)
        assert q.shape == (batch, num_agents, n_act)
        assert jnp.allclose(q, q_ref, atol=1e-4, rtol=1e-4), f"f32 merged={merged}"

    # Default deployment path: bf16 matmul operands (MXU-native on v6e/v7x),
    # f32 accumulation, generation-gated kernel path.
    prep_bf16 = prepare_params(params)
    q16 = qnet_forward(obs, prep_bf16)
    jax.block_until_ready(q16)
    assert q16.shape == (batch, num_agents, n_act)
    assert jnp.allclose(q16, q_ref, atol=5e-2, rtol=5e-2), "bf16 path"

    # Odd batch: exercises batch padding and the >=2-step grid (megacore path).
    obs_odd = jax.random.normal(jax.random.PRNGKey(1), (20, num_agents, obs_dim),
                                jnp.float32)
    q_odd = qnet_forward(obs_odd, prep_bf16)
    jax.block_until_ready(q_odd)
    assert q_odd.shape == (20, num_agents, n_act)
    assert jnp.allclose(q_odd, qnet_reference(obs_odd, params),
                        atol=5e-2, rtol=5e-2), "padded-batch path"

    print("KERNEL_OK")
</pallas_src>

<mosaic_0001>
module attributes {stable_mosaic.version = 11 : i64} {
  func.func @_qnet_kernel_merged(%arg0: i32, %arg1: memref<8x48xf32, #tpu.memory_space<vmem>>, %arg2: memref<48x384xf32, #tpu.memory_space<vmem>>, %arg3: memref<1x384xf32, #tpu.memory_space<vmem>>, %arg4: memref<384x192xf32, #tpu.memory_space<vmem>>, %arg5: memref<1x192xf32, #tpu.memory_space<vmem>>, %arg6: memref<192x128xf32, #tpu.memory_space<vmem>>, %arg7: memref<1x128xf32, #tpu.memory_space<vmem>>, %arg8: memref<8x128xf32, #tpu.memory_space<vmem>>) attributes {dimension_semantics = [#tpu.dimension_semantics<parallel>], iteration_bounds = array<i64: 1>, scalar_prefetch = 0 : i64, scratch_operands = 0 : i64, tpu.core_type = #tpu.core_type<tc>, window_params = [{transform_indices = @transform_0, window_bounds = array<i64: 8, 48>}, {pipeline_mode = #tpu.pipeline_mode<synchronous>, transform_indices = @transform_1, window_bounds = array<i64: 48, 384>}, {pipeline_mode = #tpu.pipeline_mode<synchronous>, transform_indices = @transform_2, window_bounds = array<i64: 1, 384>}, {pipeline_mode = #tpu.pipeline_mode<synchronous>, transform_indices = @transform_3, window_bounds = array<i64: 384, 192>}, {pipeline_mode = #tpu.pipeline_mode<synchronous>, transform_indices = @transform_4, window_bounds = array<i64: 1, 192>}, {pipeline_mode = #tpu.pipeline_mode<synchronous>, transform_indices = @transform_5, window_bounds = array<i64: 192, 128>}, {pipeline_mode = #tpu.pipeline_mode<synchronous>, transform_indices = @transform_6, window_bounds = array<i64: 1, 128>}, {transform_indices = @transform_7, window_bounds = array<i64: 8, 128>}]} {
    %c0 = arith.constant 0 : index
    %c0_0 = arith.constant 0 : index
    %0 = vector.load %arg1[%c0, %c0_0] : memref<8x48xf32, #tpu.memory_space<vmem>>, vector<8x48xf32>
    %c0_1 = arith.constant 0 : index
    %c0_2 = arith.constant 0 : index
    %1 = vector.load %arg2[%c0_1, %c0_2] : memref<48x384xf32, #tpu.memory_space<vmem>>, vector<48x384xf32>
    %cst = arith.constant dense<0.000000e+00> : vector<8x384xf32>
    %2 = tpu.matmul %0, %1, %cst {dimension_numbers = #tpu.dot_dimension_numbers<[1], [0], [0], [1], [0, 0, 1, 1], [], []>} : vector<8x48xf32>, vector<48x384xf32>, vector<8x384xf32> -> vector<8x384xf32>
    %c0_3 = arith.constant 0 : index
    %c0_4 = arith.constant 0 : index
    %3 = vector.load %arg3[%c0_3, %c0_4] : memref<1x384xf32, #tpu.memory_space<vmem>>, vector<1x384xf32>
    %4 = vector.broadcast %3 : vector<1x384xf32> to vector<8x384xf32>
    %5 = arith.addf %2, %4 : vector<8x384xf32>
    %cst_5 = arith.constant 0.000000e+00 : f32
    %6 = vector.broadcast %cst_5 : f32 to vector<8x384xf32>
    %7 = arith.maximumf %5, %6 : vector<8x384xf32>
    %c0_6 = arith.constant 0 : index
    %c0_7 = arith.constant 0 : index
    %8 = vector.load %arg4[%c0_6, %c0_7] : memref<384x192xf32, #tpu.memory_space<vmem>>, vector<384x192xf32>
    %cst_8 = arith.constant dense<0.000000e+00> : vector<8x192xf32>
    %9 = tpu.matmul %7, %8, %cst_8 {dimension_numbers = #tpu.dot_dimension_numbers<[1], [0], [0], [1], [0, 0, 1, 1], [], []>} : vector<8x384xf32>, vector<384x192xf32>, vector<8x192xf32> -> vector<8x192xf32>
    %c0_9 = arith.constant 0 : index
    %c0_10 = arith.constant 0 : index
    %10 = vector.load %arg5[%c0_9, %c0_10] : memref<1x192xf32, #tpu.memory_space<vmem>>, vector<1x192xf32>
    %11 = vector.broadcast %10 : vector<1x192xf32> to vector<8x192xf32>
    %12 = arith.addf %9, %11 : vector<8x192xf32>
    %cst_11 = arith.constant 0.000000e+00 : f32
    %13 = vector.broadcast %cst_11 : f32 to vector<8x192xf32>
    %14 = arith.maximumf %12, %13 : vector<8x192xf32>
    %c0_12 = arith.constant 0 : index
    %c0_13 = arith.constant 0 : index
    %15 = vector.load %arg6[%c0_12, %c0_13] : memref<192x128xf32, #tpu.memory_space<vmem>>, vector<192x128xf32>
    %cst_14 = arith.constant dense<0.000000e+00> : vector<8x128xf32>
    %16 = tpu.matmul %14, %15, %cst_14 {dimension_numbers = #tpu.dot_dimension_numbers<[1], [0], [0], [1], [0, 0, 1, 1], [], []>} : vector<8x192xf32>, vector<192x128xf32>, vector<8x128xf32> -> vector<8x128xf32>
    %c0_15 = arith.constant 0 : index
    %c0_16 = arith.constant 0 : index
    %17 = vector.load %arg7[%c0_15, %c0_16] : memref<1x128xf32, #tpu.memory_space<vmem>>, vector<1x128xf32>
    %18 = vector.broadcast %17 : vector<1x128xf32> to vector<8x128xf32>
    %19 = arith.addf %16, %18 : vector<8x128xf32>
    %c0_17 = arith.constant 0 : index
    %c0_18 = arith.constant 0 : index
    %20 = vector.load %arg8[%c0_17, %c0_18] : memref<8x128xf32, #tpu.memory_space<vmem>>, vector<8x128xf32>
    tpu.vector_store %arg8[%c0_17, %c0_18], %19 {strides = array<i32>} : memref<8x128xf32, #tpu.memory_space<vmem>>, vector<8x128xf32>,
    return
  }
  func.func @transform_0(%arg0: i32) -> (i32, i32) {
    %c0_i32 = arith.constant 0 : i32
    %c0_i32_0 = arith.constant 0 : i32
    return %arg0, %c0_i32 : i32, i32
  }
  func.func @transform_1(%arg0: i32) -> (i32, i32) {
    %c0_i32 = arith.constant 0 : i32
    %c0_i32_0 = arith.constant 0 : i32
    %c0_i32_1 = arith.constant 0 : i32
    return %c0_i32, %c0_i32_0 : i32, i32
  }
  func.func @transform_2(%arg0: i32) -> (i32, i32) {
    %c0_i32 = arith.constant 0 : i32
    %c0_i32_0 = arith.constant 0 : i32
    %c0_i32_1 = arith.constant 0 : i32
    return %c0_i32, %c0_i32_0 : i32, i32
  }
  func.func @transform_3(%arg0: i32) -> (i32, i32) {
    %c0_i32 = arith.constant 0 : i32
    %c0_i32_0 = arith.constant 0 : i32
    %c0_i32_1 = arith.constant 0 : i32
    return %c0_i32, %c0_i32_0 : i32, i32
  }
  func.func @transform_4(%arg0: i32) -> (i32, i32) {
    %c0_i32 = arith.constant 0 : i32
    %c0_i32_0 = arith.constant 0 : i32
    %c0_i32_1 = arith.constant 0 : i32
    return %c0_i32, %c0_i32_0 : i32, i32
  }
  func.func @transform_5(%arg0: i32) -> (i32, i32) {
    %c0_i32 = arith.constant 0 : i32
    %c0_i32_0 = arith.constant 0 : i32
    %c0_i32_1 = arith.constant 0 : i32
    return %c0_i32, %c0_i32_0 : i32, i32
  }
  func.func @transform_6(%arg0: i32) -> (i32, i32) {
    %c0_i32 = arith.constant 0 : i32
    %c0_i32_0 = arith.constant 0 : i32
    %c0_i32_1 = arith.constant 0 : i32
    return %c0_i32, %c0_i32_0 : i32, i32
  }
  func.func @transform_7(%arg0: i32) -> (i32, i32) {
    %c0_i32 = arith.constant 0 : i32
    %c0_i32_0 = arith.constant 0 : i32
    return %arg0, %c0_i32 : i32, i32
  }
}

</mosaic_0001>

<bundles_post_ra>
// kernel: tpu_custom_call.1
= control target key start
LH: loop header
LB: loop body
LE: loop exit
PB: predicated region body
PF: predicated region fallthrough
CT: control target
= control target key end

     0   :  { %v794_v7 = vmov 0.0   ;;  %vm63_vm0 = vcmask 392192   ;;  %v795_v23 = vmov 0.0|0.0   ;;  %vm796_vm1 = vmmov 0   ;;  %s1306_s0 = inlined_call_operand.vmem [shape: f32[8,48], index: 0, kind: input, shape index: {}]   ;;  %s1307_s1 = inlined_call_operand.vmem [shape: f32[48,384], index: 1, kind: input, shape index: {}]   ;;  %s1308_s2 = inlined_call_operand.vmem [shape: f32[1,384], index: 2, kind: input, shape index: {}]   ;;  %s1309_s3 = inlined_call_operand.vmem [shape: f32[384,192], index: 3, kind: input, shape index: {}]   ;;  %s1310_s4 = inlined_call_operand.vmem [shape: f32[1,192], index: 4, kind: input, shape index: {}]   ;;  %s1311_s5 = inlined_call_operand.vmem [shape: f32[192,128], index: 5, kind: input, shape index: {}]   ;;  %s1312_s6 = inlined_call_operand.vmem [shape: f32[1,128], index: 6, kind: input, shape index: {}]   ;;  %s1313_s7 = inlined_call_operand.hbm [shape: f32[8,128], index: 7, kind: output, shape index: {}]  }
   0x1   :  { %v29_v0 = vld [vmem:[%s1307_s1 + $0x8] sm:$0xff]  ;;  %v32_v1 = vld [vmem:[%s1307_s1 + $0x20] sm:$0xff]  ;;  %v31_v4 = vld [vmem:[%s1307_s1 + $0x18] sm:$0xff]  ;;  %131 = vmatprep.mubr.f32.mxu0 %v794_v7  ;;  %454 = vmatprep.mubr.f32.mxu1 %v794_v7 }
   0x2   :  { %v28_v2 = vld [vmem:[%s1307_s1] sm:$0xff]  ;;  %v609_v3 = vpack.c.bf16 %v32_v1, %v29_v0  ;;  %v35_v5 = vld [vmem:[%s1307_s1 + $0x38] sm:$0xff]  ;;  %v38_v6 = vld [vmem:[%s1307_s1 + $0x50] sm:$0xff] }
   0x3   :  { %v611_v8 = vpack.c.bf16 %v31_v4, %v28_v2  ;;  %v613_v9 = vpack.c.bf16 %v38_v6, %v35_v5  ;;  %v34_v10 = vld [vmem:[%s1307_s1 + $0x30] sm:$0xff]  ;;  %v37_v11 = vld [vmem:[%s1307_s1 + $0x48] sm:$0xff]  ;;  %v44_v13 = vld [vmem:[%s1307_s1 + $0x80] sm:$0xff] }
   0x4   :  { %v41_v12 = vld [vmem:[%s1307_s1 + $0x68] sm:$0xff]  ;;  %610 = vmatprep.subr.bf16.mxu0 %v609_v3  ;;  %v615_v14 = vpack.c.bf16 %v37_v11, %v34_v10  ;;  %v40_v16 = vld [vmem:[%s1307_s1 + $0x60] sm:$0xff]  ;;  %v43_v17 = vld [vmem:[%s1307_s1 + $0x78] sm:$0xff] }
   0x5   :  { %612 = vmatpush1.bf16.msra.mxu0 %v611_v8  ;;  %v617_v15 = vpack.c.bf16 %v44_v13, %v41_v12  ;;  %v619_v18 = vpack.c.bf16 %v43_v17, %v40_v16  ;;  %v30_v19 = vld [vmem:[%s1307_s1 + $0x10] sm:$0xff]  ;;  %v33_v20 = vld [vmem:[%s1307_s1 + $0x28] sm:$0xff]  ;;  %v27_v21 = vld [vmem:[%s1306_s0] sm:$0xff] }
   0x6   :  { %614 = vmatprep.subr.bf16.mxu0 %v613_v9  ;;  %v622_v22 = vpack.c.bf16 %v33_v20, %v30_v19  ;;  %v36_v24 = vld [vmem:[%s1307_s1 + $0x40] sm:$0xff]  ;;  %v39_v25 = vld [vmem:[%s1307_s1 + $0x58] sm:$0xff]  ;;  %v42_v27 = vld [vmem:[%s1307_s1 + $0x70] sm:$0xff] }
   0x7   :  { %v625_v26 = vpack.c.bf16 %v39_v25, %v36_v24  ;;  %v45_v28 = vld [vmem:[%s1307_s1 + $0x88] sm:$0xff]  ;;  %v214_v30 = vld [vmem:[%s1309_s3 + $0x18] sm:$0xff]  ;;  %v211_v32 = vld [vmem:[%s1309_s3] sm:$0xff] }
   0x8   :  { %v212_v29 = vld [vmem:[%s1309_s3 + $0x8] sm:$0xff]  ;;  %v628_v31 = vpack.c.bf16 %v45_v28, %v42_v27  ;;  %v213_v33 = vld [vmem:[%s1309_s3 + $0x10] sm:$0xff]  ;;  %v278_v36 = vld [vmem:[%s1309_s3 + $0x218] sm:$0xff] }
   0x9   :  { %616 = vmatpush1.bf16.msra.mxu0 %v615_v14  ;;  %v630_v34 = vpack.c.bf16 %v214_v30, %v212_v29  ;;  %v276_v35 = vld [vmem:[%s1309_s3 + $0x208] sm:$0xff]  ;;  %v275_v37 = vld [vmem:[%s1309_s3 + $0x200] sm:$0xff]  ;;  %v218_v39 = vld [vmem:[%s1309_s3 + $0x38] sm:$0xff]  ;;  %v632_v44 = vpack.c.bf16 %v213_v33, %v211_v32 }
   0xa   :  { %618 = vmatprep.subr.bf16.mxu0 %v617_v15  ;;  %v216_v38 = vld [vmem:[%s1309_s3 + $0x28] sm:$0xff]  ;;  %v694_v40 = vpack.c.bf16 %v278_v36, %v276_v35  ;;  %v277_v41 = vld [vmem:[%s1309_s3 + $0x210] sm:$0xff]  ;;  %v282_v45 = vld [vmem:[%s1309_s3 + $0x238] sm:$0xff] }
   0xb   :  { %v696_v42 = vpack.c.bf16 %v277_v41, %v275_v37  ;;  %v280_v43 = vld [vmem:[%s1309_s3 + $0x228] sm:$0xff]  ;;  %v279_v46 = vld [vmem:[%s1309_s3 + $0x220] sm:$0xff]  ;;  %v281_v47 = vld [vmem:[%s1309_s3 + $0x230] sm:$0xff]  ;;  %v634_v48 = vpack.c.bf16 %v218_v39, %v216_v38 }
   0xc   :  { %695 = vmatprep.subr.bf16.mxu1 %v694_v40  ;;  %v215_v49 = vld [vmem:[%s1309_s3 + $0x20] sm:$0xff]  ;;  %v217_v50 = vld [vmem:[%s1309_s3 + $0x30] sm:$0xff]  ;;  %v220_v51 = vld [vmem:[%s1309_s3 + $0x48] sm:$0xff]  ;;  %v698_v52 = vpack.c.bf16 %v282_v45, %v280_v43  ;;  %v700_v53 = vpack.c.bf16 %v281_v47, %v279_v46 }
   0xd   :  { %620 = vmatpush1.bf16.msra.mxu0 %v619_v18  ;;  %697 = vmatpush1.bf16.msra.mxu1 %v696_v42  ;;  %v222_v54 = vld [vmem:[%s1309_s3 + $0x58] sm:$0xff]  ;;  %v284_v55 = vld [vmem:[%s1309_s3 + $0x248] sm:$0xff]  ;;  %v283_v58 = vld [vmem:[%s1309_s3 + $0x240] sm:$0xff]  ;;  %v636_v60 = vpack.c.bf16 %v217_v50, %v215_v49 }
   0xe   :  { %621 = vmatprep.subr.bf16.mxu0 %v795_v23  ;;  %v286_v56 = vld [vmem:[%s1309_s3 + $0x258] sm:$0xff]  ;;  %699 = vmatprep.subr.bf16.mxu1 %v698_v52  ;;  %v285_v59 = vld [vmem:[%s1309_s3 + $0x250] sm:$0xff]  ;;  %v219_v61 = vld [vmem:[%s1309_s3 + $0x40] sm:$0xff]  ;;  %v638_v63 = vpack.c.bf16 %v222_v54, %v220_v51 }
   0xf   :  { %v702_v57 = vpack.c.bf16 %v286_v56, %v284_v55  ;;  %v221_v62 = vld [vmem:[%s1309_s3 + $0x50] sm:$0xff]  ;;  %v224_v0 = vld [vmem:[%s1309_s3 + $0x68] sm:$0xff]  ;;  %v704_v1 = vpack.c.bf16 %v285_v59, %v283_v58  ;;  %v290_v3 = vld [vmem:[%s1309_s3 + $0x278] sm:$0xff] }
  0x10   :  { %583 = vmatmul.mubr.msk.f32.vlgmr.msra.gmra.mrb[0].mxu0 %vm63_vm0, %v27_v21  ;;  %v288_v2 = vld [vmem:[%s1309_s3 + $0x268] sm:$0xff]  ;;  %v226_v4 = vld [vmem:[%s1309_s3 + $0x78] sm:$0xff]  ;;  %v287_v6 = vld [vmem:[%s1309_s3 + $0x260] sm:$0xff] }
  0x11   :  { %623 = vmatpush3.bf16.msra.mxu0 %v622_v22  ;;  %606 = vmatprep.mubr.msk.f32.mxu0 %vm796_vm1, %v794_v7  ;;  %v706_v5 = vpack.c.bf16 %v290_v3, %v288_v2  ;;  %v289_v7 = vld [vmem:[%s1309_s3 + $0x270] sm:$0xff] }
  0x12   :  { %624 = vmatprep.subr.bf16.mxu0 %v795_v23  ;;  %701 = vmatpush1.bf16.msra.mxu1 %v700_v53 }
  0x13   :  { %703 = vmatprep.subr.bf16.mxu1 %v702_v57 }
  0x15   :  { %626 = vmatpush3.bf16.msra.mxu0 %v625_v26 }
  0x16   :  { %627 = vmatprep.subr.bf16.mxu0 %v795_v23 }
  0x19   :  { %629 = vmatpush3.bf16.msra.mxu0 %v628_v31 }
  0x1a   :  { %631 = vmatprep.subr.bf16.mxu0 %v630_v34 }
  0x1c   :  { %607 = vmatmul.mubr.msk.f32.vlgmr.msra.gmra.mrb[2].mxu0 %vm63_vm0, %v27_v21 }
  0x1d   :  { %633 = vmatpush1.bf16.msra.mxu0 %v632_v44 }
  0x1e   :  { %635 = vmatprep.subr.bf16.mxu0 %v634_v48 }
  0x1f   :  { %12 = vsyncpa [#allocation3], 0  ;;  %v640_v8 = vpack.c.bf16 %v221_v62, %v219_v61  ;;  %v642_v9 = vpack.c.bf16 %v226_v4, %v224_v0  ;;  %v223_v10 = vld [vmem:[%s1309_s3 + $0x60] sm:$0xff]  ;;  %v225_v11 = vld [vmem:[%s1309_s3 + $0x70] sm:$0xff]  ;;  %705 = vmatpush1.bf16.msra.mxu1 %v704_v1  ;;  %v708_v12 = vpack.c.bf16 %v289_v7, %v287_v6  ;;  %vm494_vm2 = vcmask 523264  }
  0x20   :  { %v228_v13 = vld [vmem:[%s1309_s3 + $0x88] sm:$0xff]  ;;  %v230_v14 = vld [vmem:[%s1309_s3 + $0x98] sm:$0xff]  ;;  %707 = vmatprep.subr.bf16.mxu1 %v706_v5  ;;  %v644_v15 = vpack.c.bf16 %v225_v11, %v223_v10  ;;  %v227_v17 = vld [vmem:[%s1309_s3 + $0x80] sm:$0xff] }
  0x21   :  { %637 = vmatpush1.bf16.msra.mxu0 %v636_v60  ;;  %v646_v16 = vpack.c.bf16 %v230_v14, %v228_v13  ;;  %v229_v18 = vld [vmem:[%s1309_s3 + $0x90] sm:$0xff]  ;;  %v232_v19 = vld [vmem:[%s1309_s3 + $0xa8] sm:$0xff]  ;;  %v234_v20 = vld [vmem:[%s1309_s3 + $0xb8] sm:$0xff] }
  0x22   :  { %639 = vmatprep.subr.bf16.mxu0 %v638_v63  ;;  %v648_v21 = vpack.c.bf16 %v229_v18, %v227_v17  ;;  %v650_v22 = vpack.c.bf16 %v234_v20, %v232_v19  ;;  %v231_v24 = vld [vmem:[%s1309_s3 + $0xa0] sm:$0xff]  ;;  %v233_v25 = vld [vmem:[%s1309_s3 + $0xb0] sm:$0xff]  ;;  %v236_v26 = vld [vmem:[%s1309_s3 + $0xc8] sm:$0xff] }
  0x23   :  { %709 = vmatpush1.bf16.msra.mxu1 %v708_v12  ;;  %v238_v27 = vld [vmem:[%s1309_s3 + $0xd8] sm:$0xff]  ;;  %v652_v28 = vpack.c.bf16 %v233_v25, %v231_v24  ;;  %v235_v30 = vld [vmem:[%s1309_s3 + $0xc0] sm:$0xff]  ;;  %v237_v31 = vld [vmem:[%s1309_s3 + $0xd0] sm:$0xff] }
  0x24   :  { %v654_v29 = vpack.c.bf16 %v238_v27, %v236_v26  ;;  %v240_v32 = vld [vmem:[%s1309_s3 + $0xe8] sm:$0xff]  ;;  %v242_v33 = vld [vmem:[%s1309_s3 + $0xf8] sm:$0xff]  ;;  %v656_v34 = vpack.c.bf16 %v237_v31, %v235_v30  ;;  %v239_v36 = vld [vmem:[%s1309_s3 + $0xe0] sm:$0xff] }
  0x25   :  { %641 = vmatpush1.bf16.msra.mxu0 %v640_v8  ;;  %v658_v35 = vpack.c.bf16 %v242_v33, %v240_v32  ;;  %v241_v37 = vld [vmem:[%s1309_s3 + $0xf0] sm:$0xff]  ;;  %v244_v38 = vld [vmem:[%s1309_s3 + $0x108] sm:$0xff]  ;;  %v246_v39 = vld [vmem:[%s1309_s3 + $0x118] sm:$0xff] }
  0x26   :  { %643 = vmatprep.subr.bf16.mxu0 %v642_v9  ;;  %v660_v40 = vpack.c.bf16 %v241_v37, %v239_v36  ;;  %v662_v41 = vpack.c.bf16 %v246_v39, %v244_v38  ;;  %v243_v42 = vld [vmem:[%s1309_s3 + $0x100] sm:$0xff]  ;;  %v245_v43 = vld [vmem:[%s1309_s3 + $0x110] sm:$0xff]  ;;  %v248_v44 = vld [vmem:[%s1309_s3 + $0x128] sm:$0xff] }
  0x27   :  { %v250_v45 = vld [vmem:[%s1309_s3 + $0x138] sm:$0xff]  ;;  %v664_v46 = vpack.c.bf16 %v245_v43, %v243_v42  ;;  %v247_v48 = vld [vmem:[%s1309_s3 + $0x120] sm:$0xff]  ;;  %v249_v49 = vld [vmem:[%s1309_s3 + $0x130] sm:$0xff] }
  0x28   :  { %v666_v47 = vpack.c.bf16 %v250_v45, %v248_v44  ;;  %v252_v50 = vld [vmem:[%s1309_s3 + $0x148] sm:$0xff]  ;;  %v254_v51 = vld [vmem:[%s1309_s3 + $0x158] sm:$0xff]  ;;  %v668_v52 = vpack.c.bf16 %v249_v49, %v247_v48  ;;  %v251_v54 = vld [vmem:[%s1309_s3 + $0x140] sm:$0xff]  ;;  %v48_v48 = vlaneseq }
  0x29   :  { %645 = vmatpush1.bf16.msra.mxu0 %v644_v15  ;;  %v670_v53 = vpack.c.bf16 %v254_v51, %v252_v50  ;;  %v253_v55 = vld [vmem:[%s1309_s3 + $0x150] sm:$0xff]  ;;  %v256_v56 = vld [vmem:[%s1309_s3 + $0x168] sm:$0xff]  ;;  %v258_v57 = vld [vmem:[%s1309_s3 + $0x178] sm:$0xff] }
  0x2a   :  { %647 = vmatprep.subr.bf16.mxu0 %v646_v16  ;;  %v672_v58 = vpack.c.bf16 %v253_v55, %v251_v54  ;;  %v674_v59 = vpack.c.bf16 %v258_v57, %v256_v56  ;;  %v255_v60 = vld [vmem:[%s1309_s3 + $0x160] sm:$0xff]  ;;  %v257_v61 = vld [vmem:[%s1309_s3 + $0x170] sm:$0xff]  ;;  %v260_v62 = vld [vmem:[%s1309_s3 + $0x188] sm:$0xff]  ;;  %v1189_v49 = vshrl.u32 %v48_v48, 7 }
  0x2b   :  { %v262_v63 = vld [vmem:[%s1309_s3 + $0x198] sm:$0xff]  ;;  %v676_v0 = vpack.c.bf16 %v257_v61, %v255_v60  ;;  %v259_v2 = vld [vmem:[%s1309_s3 + $0x180] sm:$0xff]  ;;  %v261_v3 = vld [vmem:[%s1309_s3 + $0x190] sm:$0xff] }
  0x2c   :  { %v678_v1 = vpack.c.bf16 %v262_v63, %v260_v62  ;;  %v264_v4 = vld [vmem:[%s1309_s3 + $0x1a8] sm:$0xff]  ;;  %v266_v5 = vld [vmem:[%s1309_s3 + $0x1b8] sm:$0xff]  ;;  %v680_v6 = vpack.c.bf16 %v261_v3, %v259_v2  ;;  %v263_v8 = vld [vmem:[%s1309_s3 + $0x1a0] sm:$0xff]  ;;  %v50_v50 = vsub.s32 0, %v1189_v49  ;;  %v58_v61 = vsub.s32 2, %v1189_v49 }
  0x2d   :  { %649 = vmatpush1.bf16.msra.mxu0 %v648_v21  ;;  %v682_v7 = vpack.c.bf16 %v266_v5, %v264_v4  ;;  %v265_v9 = vld [vmem:[%s1309_s3 + $0x1b0] sm:$0xff]  ;;  %v268_v10 = vld [vmem:[%s1309_s3 + $0x1c8] sm:$0xff]  ;;  %v270_v11 = vld [vmem:[%s1309_s3 + $0x1d8] sm:$0xff] }
  0x2e   :  { %651 = vmatprep.subr.bf16.mxu0 %v650_v22  ;;  %v684_v12 = vpack.c.bf16 %v265_v9, %v263_v8  ;;  %v686_v13 = vpack.c.bf16 %v270_v11, %v268_v10  ;;  %v267_v14 = vld [vmem:[%s1309_s3 + $0x1c0] sm:$0xff]  ;;  %v269_v15 = vld [vmem:[%s1309_s3 + $0x1d0] sm:$0xff]  ;;  %v292_v17 = vld [vmem:[%s1309_s3 + $0x288] sm:$0xff] }
  0x2f   :  { %v688_v16 = vpack.c.bf16 %v269_v15, %v267_v14  ;;  %v294_v18 = vld [vmem:[%s1309_s3 + $0x298] sm:$0xff]  ;;  %v291_v20 = vld [vmem:[%s1309_s3 + $0x280] sm:$0xff]  ;;  %v293_v21 = vld [vmem:[%s1309_s3 + $0x290] sm:$0xff] }
  0x30   :  { %v710_v19 = vpack.c.bf16 %v294_v18, %v292_v17  ;;  %v712_v22 = vpack.c.bf16 %v293_v21, %v291_v20  ;;  %v272_v24 = vld [vmem:[%s1309_s3 + $0x1e8] sm:$0xff]  ;;  %v274_v25 = vld [vmem:[%s1309_s3 + $0x1f8] sm:$0xff]  ;;  %v271_v27 = vld [vmem:[%s1309_s3 + $0x1e0] sm:$0xff] }
  0x31   :  { %653 = vmatpush1.bf16.msra.mxu0 %v652_v28  ;;  %v690_v26 = vpack.c.bf16 %v274_v25, %v272_v24  ;;  %v273_v28 = vld [vmem:[%s1309_s3 + $0x1f0] sm:$0xff]  ;;  %v296_v30 = vld [vmem:[%s1309_s3 + $0x2a8] sm:$0xff]  ;;  %v298_v31 = vld [vmem:[%s1309_s3 + $0x2b8] sm:$0xff] }
  0x32   :  { %655 = vmatprep.subr.bf16.mxu0 %v654_v29  ;;  %711 = vmatprep.subr.bf16.mxu1 %v710_v19  ;;  %v692_v29 = vpack.c.bf16 %v273_v28, %v271_v27  ;;  %v714_v32 = vpack.c.bf16 %v298_v31, %v296_v30  ;;  %v295_v33 = vld [vmem:[%s1309_s3 + $0x2a0] sm:$0xff]  ;;  %v300_v36 = vld [vmem:[%s1309_s3 + $0x2c8] sm:$0xff]  ;;  %v302_v37 = vld [vmem:[%s1309_s3 + $0x2d8] sm:$0xff] }
  0x33   :  { %713 = vmatpush1.bf16.msra.mxu1 %v712_v22  ;;  %v718_v38 = vpack.c.bf16 %v302_v37, %v300_v36  ;;  %v299_v39 = vld [vmem:[%s1309_s3 + $0x2c0] sm:$0xff]  ;;  %v304_v42 = vld [vmem:[%s1309_s3 + $0x2e8] sm:$0xff]  ;;  %v306_v43 = vld [vmem:[%s1309_s3 + $0x2f8] sm:$0xff] }
  0x34   :  { %715 = vmatprep.subr.bf16.mxu1 %v714_v32  ;;  %v722_v44 = vpack.c.bf16 %v306_v43, %v304_v42  ;;  %v303_v45 = vld [vmem:[%s1309_s3 + $0x2e0] sm:$0xff]  ;;  %v468_v10 = vld [vmem:[%s1311_s5 + $0x28] sm:$0xff]  ;;  %v473_v18 = vld [vmem:[%s1311_s5 + $0x50] sm:$0xff] }
  0x35   :  { %657 = vmatpush1.bf16.msra.mxu0 %v656_v34  ;;  %v297_v34 = vld [vmem:[%s1309_s3 + $0x2b0] sm:$0xff]  ;;  %v46_v51 = vld [vmem:[%s1308_s2] sm:$0x7]  ;;  %v474_v19 = vld [vmem:[%s1311_s5 + $0x58] sm:$0xff] }
  0x36   :  { %659 = vmatprep.subr.bf16.mxu0 %v658_v35  ;;  %v716_v35 = vpack.c.bf16 %v297_v34, %v295_v33  ;;  %v59_v62 = vrot.slane %v46_v51, %v58_v61  ;;  %v463_v63 = vld [vmem:[%s1311_s5] sm:$0xff]  ;;  %v742_v20 = vpack.c.bf16 %v474_v19, %v473_v18  ;;  %v476_v22 = vld [vmem:[%s1311_s5 + $0x68] sm:$0xff]  ;;  %v477_v25 = vld [vmem:[%s1311_s5 + $0x70] sm:$0xff] }
  0x37   :  { %v467_v9 = vld [vmem:[%s1311_s5 + $0x20] sm:$0xff]  ;;  %v481_v31 = vld [vmem:[%s1311_s5 + $0x90] sm:$0xff]  ;;  %v482_v32 = vld [vmem:[%s1311_s5 + $0x98] sm:$0xff] }
  0x38   :  { %717 = vmatpush1.bf16.msra.mxu1 %v716_v35  ;;  %v733_v11 = vpack.c.bf16 %v468_v10, %v467_v9  ;;  %v471_v15 = vld [vmem:[%s1311_s5 + $0x40] sm:$0xff]  ;;  %v754_v33 = vpack.c.bf16 %v482_v32, %v481_v31  ;;  %v484_v35 = vld [vmem:[%s1311_s5 + $0xa8] sm:$0xff]  ;;  %v485_v37 = vld [vmem:[%s1311_s5 + $0xb0] sm:$0xff] }
  0x39   :  { %661 = vmatpush1.bf16.msra.mxu0 %v660_v40  ;;  %v301_v40 = vld [vmem:[%s1309_s3 + $0x2d0] sm:$0xff]  ;;  %719 = vmatprep.subr.bf16.mxu1 %v718_v38  ;;  %v475_v21 = vld [vmem:[%s1311_s5 + $0x60] sm:$0xff]  ;;  %v486_v38 = vld [vmem:[%s1311_s5 + $0xb8] sm:$0xff] }
  0x3a   :  { %663 = vmatprep.subr.bf16.mxu0 %v662_v41  ;;  %v720_v41 = vpack.c.bf16 %v301_v40, %v299_v39  ;;  %v745_v24 = vpack.c.bf16 %v476_v22, %v475_v21  ;;  %v479_v28 = vld [vmem:[%s1311_s5 + $0x80] sm:$0xff]  ;;  %v760_v39 = vpack.c.bf16 %v486_v38, %v485_v37 }
  0x3b   :  { %v483_v34 = vld [vmem:[%s1311_s5 + $0xa0] sm:$0xff] }
  0x3c   :  { %721 = vmatpush1.bf16.msra.mxu1 %v720_v41  ;;  %v757_v36 = vpack.c.bf16 %v484_v35, %v483_v34  ;;  %v307_v42 = vld [vmem:[%s1310_s4] sm:$0x3]  ;;  %s797_s4 = smov [#allocation2]  }
  0x3d   :  { %665 = vmatpush1.bf16.msra.mxu0 %v664_v46  ;;  %v305_v46 = vld [vmem:[%s1309_s3 + $0x2f0] sm:$0xff]  ;;  %723 = vmatprep.subr.bf16.mxu1 %v722_v44  ;;  %v312_v43 = vrot.slane %v307_v42, %v50_v50  ;;  %s575_s30 = sshll.u32 %s797_s4, 4  ;;  %s576_s30 = int_to_ptr.vmem [resolvable:$true] %s575_s30 }
  0x3e   :  { %667 = vmatprep.subr.bf16.mxu0 %v666_v47  ;;  %v724_v47 = vpack.c.bf16 %v305_v46, %v303_v45  ;;  %s770_s8 = scalar_lea.vmem %s576_s30, 128  ;;  %p775_p1 = scmp.lt.s32.totalorder %s576_s30, %s576_s30 }
  0x3f   :  { %p771_p0 = scmp.ne.s32.totalorder %s576_s30, %s770_s8  ;;  %p776_p2 = scmp.lt.s32.totalorder %s770_s8, %s770_s8 }
  0x40   :  { %725 = vmatpush1.bf16.msra.mxu1 %v724_v47 }
  0x41   :  { %669 = vmatpush1.bf16.msra.mxu0 %v668_v52  ;;  %726 = vmatprep.subr.bf16.mxu1 %v795_v23  ;;  %v54_v52 = vsub.s32 1, %v1189_v49  ;;  %p777_p3 = por %p776_p2, %p775_p1 }
  0x42   :  { %671 = vmatprep.subr.bf16.mxu0 %v670_v53  ;;  %v51_v53 = vrot.slane %v46_v51, %v50_v50 }
  0x43   :  { %v55_v54 = vrot.slane %v46_v51, %v54_v52  ;;  %p778_p4 = pnand %p777_p3, %p771_p0 }
  0x45   :  { %673 = vmatpush1.bf16.msra.mxu0 %v672_v58 }
  0x46   :  { %675 = vmatprep.subr.bf16.mxu0 %v674_v59 }
  0x49   :  { %677 = vmatpush1.bf16.msra.mxu0 %v676_v0  ;;  %v464_v0 = vld [vmem:[%s1311_s5 + $0x8] sm:$0xff] }
  0x4a   :  { %679 = vmatprep.subr.bf16.mxu0 %v678_v1  ;;  %v727_v4 = vpack.c.bf16 %v464_v0, %v463_v63 }
  0x4d   :  { %681 = vmatpush1.bf16.msra.mxu0 %v680_v6  ;;  %v465_v6 = vld [vmem:[%s1311_s5 + $0x10] sm:$0xff] }
  0x4e   :  { %683 = vmatprep.subr.bf16.mxu0 %v682_v7  ;;  %v466_v7 = vld [vmem:[%s1311_s5 + $0x18] sm:$0xff] }
  0x4f   :  { %v730_v8 = vpack.c.bf16 %v466_v7, %v465_v6 }
  0x51   :  { %685 = vmatpush1.bf16.msra.mxu0 %v684_v12  ;;  %v469_v12 = vld [vmem:[%s1311_s5 + $0x30] sm:$0xff] }
  0x52   :  { %687 = vmatprep.subr.bf16.mxu0 %v686_v13  ;;  %v470_v13 = vld [vmem:[%s1311_s5 + $0x38] sm:$0xff] }
  0x53   :  { %v736_v14 = vpack.c.bf16 %v470_v13, %v469_v12 }
  0x55   :  { %689 = vmatpush1.bf16.msra.mxu0 %v688_v16  ;;  %v472_v16 = vld [vmem:[%s1311_s5 + $0x48] sm:$0xff] }
  0x56   :  { %691 = vmatprep.subr.bf16.mxu0 %v690_v26  ;;  %v739_v17 = vpack.c.bf16 %v472_v16, %v471_v15  ;;  %v478_v26 = vld [vmem:[%s1311_s5 + $0x78] sm:$0xff] }
  0x57   :  { %v748_v27 = vpack.c.bf16 %v478_v26, %v477_v25 }
  0x59   :  { %693 = vmatpush1.bf16.msra.mxu0 %v692_v29  ;;  %v480_v29 = vld [vmem:[%s1311_s5 + $0x88] sm:$0xff] }
  0x5a   :  { %v751_v30 = vpack.c.bf16 %v480_v29, %v479_v28 }
  0xe3   :  { %v133_v55 = vpop.f32.mrb[0].mxu0 }
  0xe4   :  { %v134_v56 = vadd.f32 %v133_v55, %v51_v53  ;;  %v135_v57 = vpop.f32.mrb[1].mxu0  ;;  %v585_v55 = vld [vmem:[%s1312_s6] ss:$0 sm:$0xff] }
  0xe5   :  { %v136_v58 = vadd.f32 %v135_v57, %v55_v54 }
  0xe6   :  { %v208_v59 = vmax.f32 %v134_v56, 0.0 }
  0xe7   :  { %v209_v60 = vmax.f32 %v136_v58, 0.0 }
  0xe9   :  { %383 = vmatprep.mubr.f32.mxu0 %v209_v60 }
  0xea   :  { %384 = vmatmul.mubr.f32.vlgmr.msra.gmra.mrb[4].mxu0 %v208_v59 }
  0xef   :  { %v204_v1 = vpop.f32.mrb[2].mxu0 }
  0xf0   :  { %v205_v2 = vadd.f32 %v204_v1, %v59_v62  ;;  %v608_v3 = vpop.f32.mrb[3].mxu0 }
  0xf2   :  { %v210_v5 = vmax.f32 %v205_v2, 0.0 }
  0xf4   :  { %455 = vmatmul.mubr.f32.vlgmr.msra.gmra.mrb[0].mxu1 %v210_v5 }
  0xf5   :  { %728 = vmatpush1.bf16.msra.mxu1 %v727_v4 }
  0xf6   :  { %729 = vmatprep.subr.bf16.mxu1 %v795_v23 }
  0xf9   :  { %731 = vmatpush1.bf16.msra.mxu1 %v730_v8 }
  0xfa   :  { %732 = vmatprep.subr.bf16.mxu1 %v795_v23 }
  0xfd   :  { %734 = vmatpush1.bf16.msra.mxu1 %v733_v11 }
  0xfe   :  { %735 = vmatprep.subr.bf16.mxu1 %v795_v23 }
 0x101   :  { %737 = vmatpush1.bf16.msra.mxu1 %v736_v14 }
 0x102   :  { %738 = vmatprep.subr.bf16.mxu1 %v795_v23 }
 0x105   :  { %740 = vmatpush1.bf16.msra.mxu1 %v739_v17 }
 0x106   :  { %741 = vmatprep.subr.bf16.mxu1 %v795_v23 }
 0x109   :  { %743 = vmatpush1.bf16.msra.mxu1 %v742_v20 }
 0x10a   :  { %744 = vmatprep.subr.bf16.mxu1 %v795_v23 }
 0x10d   :  { %746 = vmatpush1.bf16.msra.mxu1 %v745_v24 }
 0x10e   :  { %747 = vmatprep.subr.bf16.mxu1 %v795_v23 }
 0x111   :  { %749 = vmatpush1.bf16.msra.mxu1 %v748_v27 }
 0x112   :  { %750 = vmatprep.subr.bf16.mxu1 %v795_v23 }
 0x115   :  { %752 = vmatpush1.bf16.msra.mxu1 %v751_v30 }
 0x116   :  { %753 = vmatprep.subr.bf16.mxu1 %v795_v23 }
 0x119   :  { %755 = vmatpush1.bf16.msra.mxu1 %v754_v33 }
 0x11a   :  { %756 = vmatprep.subr.bf16.mxu1 %v795_v23 }
 0x11d   :  { %758 = vmatpush1.bf16.msra.mxu1 %v757_v36 }
 0x11e   :  { %759 = vmatprep.subr.bf16.mxu1 %v795_v23  ;;  %v316_v23 = vrot.slane %v307_v42, %v54_v52 }
 0x121   :  { %761 = vmatpush1.bf16.msra.mxu1 %v760_v39 }
 0x1bd   :  { %v385_v40 = vpop.f32.mrb[4].mxu0 }
 0x1be   :  { %v387_v41 = vpop.f32.mrb[5].mxu0  ;;  %v386_v44 = vadd.f32 %v385_v40, %v312_v43 }
 0x1bf   :  { %v388_v45 = vadd.f32 %v387_v41, %v316_v23 }
 0x1c7   :  { %v456_v46 = vpop.f32.mrb[0].mxu1 }
 0x1c8   :  { %v457_v47 = vadd.f32 %v456_v46, %v386_v44  ;;  %v458_v48 = vpop.f32.mrb[1].mxu1 }
 0x1c9   :  { %v459_v51 = vadd.f32 %v458_v48, %v388_v45 }
 0x1ca   :  { %v461_v54 = vmax.f32 %v457_v47, 0.0 }
 0x1cb   :  { %v462_v53 = vmax.f32 %v459_v51, 0.0 }
 0x1cd   :  { %586 = vmatprep.mubr.msk.f32.mxu1 %vm494_vm2, %v462_v53 }
 0x1ce   :  { %563 = vmatmul.mubr.f32.vlgmr.msra.gmra.mrb[2].mxu1 %v461_v54 }
 0x2a1   :  { %v564_v50 = vpop.f32.mrb[2].mxu1 }
 0x2a2   :  { %v565_v49 = vadd.f32 %v585_v55, %v564_v50  ;;  %v566_v52 = vpop.f32.mrb[3].mxu1 }
 0x2a4   :  { %568 = vst [vmem:[#allocation2] sm:$0xff] %v565_v49 }
 0x2a5   :  { %781 = shalt.err (!%p778_p4)
}
 0x2a6   :  { %s782_s3 = scalar_lea.hbm %s1313_s7, 128 }
 0x2a7   :  { %p783_p5 = scmp.ne.s32.totalorder %s1313_s7, %s782_s3  ;;  %p786_p6 = scmp.lt.u32.totalorder %s782_s3, %s1313_s7 }
 0x2a9   :  { %p788_p7 = pnand %p786_p6, %p783_p5 }
 0x2ab   :  { %791 = shalt.err (!%p788_p7)
}
 0x2ac   :  { %578 = dma.vmem_to_hbm [thread:$0]  %s576_s30, 128, %s1313_s7, [#allocation3]  }
 0x2ad   :  { %792 = dma.done.wait [#allocation3], 128  }
 0x2ae   :  { %793 = vsyncadd [#allocation3], 4294967168 }
 0x2af   :  { %582 = vsyncpa [#allocation3], 1 }

</bundles_post_ra>
